<compile_context>
chip_gen: v7x
topology: tpu7x:2x2x1
jax: 0.10.0
libtpu: 0.0.40
codegen_flags: <defaults>
</compile_context>

<pallas_src>
import math
import functools

import jax
import jax.numpy as jnp
from jax import lax
from jax.experimental import pallas as pl
from jax.experimental.pallas import tpu as pltpu


def _fit_tile(dim, nominal):
    """`nominal` if it evenly tiles `dim`, else fall back to the full dim.

    Nominal tiles are always multiples of (8, 128) on (sublane, lane) axes, and
    a full-dim block is always legal, so the result satisfies TPU blocking.
    """
    return nominal if dim % nominal == 0 else dim


# ---------------------------------------------------------------------------
# Kernel 1: grouped, tiled matmul  (G, M, K) @ (G, K, N) -> (G, M, N)
# ---------------------------------------------------------------------------
def _matmul_kernel(x_ref, w_ref, o_ref, acc_ref):
    k = pl.program_id(3)

    @pl.when(k == 0)
    def _init():
        acc_ref[...] = jnp.zeros(acc_ref.shape, dtype=acc_ref.dtype)

    # bf16 (or f32) operands, always f32 accumulation on the MXU.
    acc_ref[...] += jnp.dot(x_ref[0], w_ref[0],
                            preferred_element_type=jnp.float32)

    @pl.when(k == pl.num_programs(3) - 1)
    def _finalize():
        o_ref[0] = acc_ref[...].astype(o_ref.dtype)


def pallas_matmul_grouped(xs, ws, *, out_dtype=None, tm=256, tn=256, tk=512):
    """xs: (G, M, K), ws: (G, K, N) -> (G, M, N)."""
    G, M, K = xs.shape
    Gw, Kw, N = ws.shape
    assert G == Gw and K == Kw
    out_dtype = out_dtype or xs.dtype
    tm, tn, tk = _fit_tile(M, tm), _fit_tile(N, tn), _fit_tile(K, tk)

    grid = (G, M // tm, N // tn, K // tk)
    return pl.pallas_call(
        _matmul_kernel,
        out_shape=jax.ShapeDtypeStruct((G, M, N), out_dtype),
        grid_spec=pltpu.PrefetchScalarGridSpec(
            num_scalar_prefetch=0,
            grid=grid,
            in_specs=[
                pl.BlockSpec((1, tm, tk), lambda g, i, j, k: (g, i, k)),
                pl.BlockSpec((1, tk, tn), lambda g, i, j, k: (g, k, j)),
            ],
            out_specs=pl.BlockSpec((1, tm, tn), lambda g, i, j, k: (g, i, j)),
            scratch_shapes=[pltpu.VMEM((tm, tn), jnp.float32)],
        ),
        compiler_params=pltpu.CompilerParams(
            dimension_semantics=("parallel", "parallel", "parallel",
                                 "arbitrary")),
    )(xs, ws)


def pallas_matmul(x, w, **kw):
    """x: (M, K), w: (K, N) -> (M, N)."""
    return pallas_matmul_grouped(x[None], w[None], **kw)[0]


# ---------------------------------------------------------------------------
# Kernel 2: flash-style multi-head attention with additive TUPE bias.
# Q/K/V/ctx are (B, S, H*Dh) slabs; heads are lane slices inside the kernel.
# ---------------------------------------------------------------------------
def _flash_attention_kernel(q_ref, k_ref, v_ref, t_ref, o_ref,
                            m_ref, l_ref, acc_ref,
                            *, n_heads, d_head, scale):
    kv = pl.program_id(2)

    @pl.when(kv == 0)
    def _init():
        m_ref[...] = jnp.full(m_ref.shape, -jnp.inf, dtype=m_ref.dtype)
        l_ref[...] = jnp.zeros(l_ref.shape, dtype=l_ref.dtype)
        acc_ref[...] = jnp.zeros(acc_ref.shape, dtype=acc_ref.dtype)

    q = q_ref[0]   # (tq,  H*Dh)
    k = k_ref[0]   # (tkv, H*Dh)
    v = v_ref[0]   # (tkv, H*Dh)

    # Static per-head loop (n_heads is a small compile-time constant); head
    # slices live on the lane axis so the slabs stay lane-dense.
    for h in range(n_heads):
        sl = slice(h * d_head, (h + 1) * d_head)
        # scores_h = Q_h K_h^T * scale + TUPE_h  (contract last dims; no k.T).
        s = lax.dot_general(q[:, sl], k[:, sl],
                            (((1,), (1,)), ((), ())),
                            preferred_element_type=jnp.float32)
        s = s * scale + t_ref[0, h].astype(jnp.float32)

        m_prev = m_ref[h]                                        # (tq, 1)
        m_new = jnp.maximum(m_prev, jnp.max(s, axis=-1, keepdims=True))
        alpha = jnp.exp(m_prev - m_new)
        p = jnp.exp(s - m_new)                                   # (tq, tkv) f32
        l_ref[h] = alpha * l_ref[h] + jnp.sum(p, axis=-1, keepdims=True)
        acc_ref[:, sl] = (alpha * acc_ref[:, sl] +
                          jnp.dot(p.astype(v.dtype), v[:, sl],
                                  preferred_element_type=jnp.float32))
        m_ref[h] = m_new

    @pl.when(kv == pl.num_programs(2) - 1)
    def _finalize():
        for h in range(n_heads):
            sl = slice(h * d_head, (h + 1) * d_head)
            acc_ref[:, sl] = acc_ref[:, sl] * pl.reciprocal(l_ref[h],
                                                            approx=True)
        o_ref[0] = acc_ref[...].astype(o_ref.dtype)


def pallas_attention(Qp, Kp, Vp, TUPE, *, n_heads, tq=256, tkv=512):
    """Qp: (B,Sq,Dm), Kp/Vp: (B,Sk,Dm), TUPE: (B,H,Sq,Sk) -> (B,Sq,Dm)."""
    B, Sq, Dm = Qp.shape
    Sk = Kp.shape[1]
    assert Dm % n_heads == 0
    d_head = Dm // n_heads
    assert TUPE.shape == (B, n_heads, Sq, Sk)
    tq, tkv = _fit_tile(Sq, tq), _fit_tile(Sk, tkv)
    scale = 1.0 / math.sqrt(2.0 * d_head)

    kernel = functools.partial(_flash_attention_kernel, n_heads=n_heads,
                               d_head=d_head, scale=scale)
    grid = (B, Sq // tq, Sk // tkv)
    return pl.pallas_call(
        kernel,
        out_shape=jax.ShapeDtypeStruct((B, Sq, Dm), Qp.dtype),
        grid_spec=pltpu.PrefetchScalarGridSpec(
            num_scalar_prefetch=0,
            grid=grid,
            in_specs=[
                pl.BlockSpec((1, tq, Dm), lambda b, qi, ki: (b, qi, 0)),
                pl.BlockSpec((1, tkv, Dm), lambda b, qi, ki: (b, ki, 0)),
                pl.BlockSpec((1, tkv, Dm), lambda b, qi, ki: (b, ki, 0)),
                pl.BlockSpec((1, n_heads, tq, tkv),
                             lambda b, qi, ki: (b, 0, qi, ki)),
            ],
            out_specs=pl.BlockSpec((1, tq, Dm), lambda b, qi, ki: (b, qi, 0)),
            scratch_shapes=[
                pltpu.VMEM((n_heads, tq, 1), jnp.float32),   # running max m
                pltpu.VMEM((n_heads, tq, 1), jnp.float32),   # running sum l
                pltpu.VMEM((tq, Dm), jnp.float32),           # context accum
            ],
        ),
        compiler_params=pltpu.CompilerParams(
            dimension_semantics=("parallel", "parallel", "arbitrary")),
    )(Qp, Kp, Vp, TUPE)


# ---------------------------------------------------------------------------
# Module-level forward (glue: casts / reshapes / lane splits only — no
# transposes, no extra HBM round trips).
# ---------------------------------------------------------------------------
def multi_head_attention_forward(Q, K, V, TUPE, params, n_heads, *,
                                 compute_dtype=jnp.bfloat16,
                                 fuse_qkv=None,
                                 mm_tiles=(256, 256, 512),
                                 attn_tiles=(256, 512)):
    # TODO(synk): mask path (masked_fill -1e9) and train-mode dropout are not
    #             implemented; call with mask=None (eval mode).
    B, Sq, E = Q.shape
    Sk, Sv = K.shape[1], V.shape[1]
    d_model = params["Wq"].shape[1]
    assert d_model % n_heads == 0
    cd = compute_dtype
    tm, tn, tk = mm_tiles
    tq, tkv = attn_tiles

    if fuse_qkv is None:
        fuse_qkv = (Q is K) and (K is V)     # self-attention fast path

    if fuse_qkv:
        # One matmul with Wq|Wk|Wv concatenated along N: activation read once,
        # lane-dense 3*d_model output.
        x = Q.reshape(B * Sq, E).astype(cd)
        w_qkv = jnp.concatenate(
            [params["Wq"], params["Wk"], params["Wv"]], axis=1).astype(cd)
        proj = pallas_matmul(x, w_qkv, out_dtype=cd, tm=tm, tn=tn, tk=tk)
        Qp = proj[:, :d_model].reshape(B, Sq, d_model)
        Kp = proj[:, d_model:2 * d_model].reshape(B, Sk, d_model)
        Vp = proj[:, 2 * d_model:].reshape(B, Sv, d_model)
    else:
        def proj1(x, w, S):
            y = pallas_matmul(x.reshape(B * S, E).astype(cd), w.astype(cd),
                              out_dtype=cd, tm=tm, tn=tn, tk=tk)
            return y.reshape(B, S, d_model)
        Qp = proj1(Q, params["Wq"], Sq)
        Kp = proj1(K, params["Wk"], Sk)
        Vp = proj1(V, params["Wv"], Sv)

    ctx = pallas_attention(Qp, Kp, Vp, TUPE.astype(cd),
                           n_heads=n_heads, tq=tq, tkv=tkv)   # (B, Sq, d_model)

    out = pallas_matmul(ctx.reshape(B * Sq, d_model),
                        params["Wo"].astype(cd),
                        out_dtype=jnp.float32, tm=tm, tn=tn, tk=tk)
    return out.reshape(B, Sq, params["Wo"].shape[1])


# ---------------------------------------------------------------------------
# Pure-JAX f32 reference (mirrors the PyTorch module)
# ---------------------------------------------------------------------------
def reference_forward(Q, K, V, TUPE, params, n_heads):
    B, Sq, E = Q.shape
    d_model = params["Wq"].shape[1]
    d_head = d_model // n_heads

    def proj(x, w):
        S = x.shape[1]
        return jnp.transpose((x @ w).reshape(B, S, n_heads, d_head),
                             (0, 2, 1, 3))

    Qh, Kh, Vh = proj(Q, params["Wq"]), proj(K, params["Wk"]), proj(V, params["Wv"])
    scores = jnp.einsum("bhqd,bhkd->bhqk", Qh, Kh) / math.sqrt(2 * d_head) + TUPE
    p = jax.nn.softmax(scores, axis=-1)
    ctx = jnp.einsum("bhqk,bhkd->bhqd", p, Vh)
    concat = jnp.transpose(ctx, (0, 2, 1, 3)).reshape(B, Sq, d_model)
    return concat @ params["Wo"]


def _make_params(key, d_embed, d_model):
    kq, kk, kv, ko = jax.random.split(key, 4)
    b_in = 1.0 / math.sqrt(d_embed)
    b_mid = 1.0 / math.sqrt(d_model)
    # Stored as (in, out) so kernels compute x @ W directly
    # (== nn.Linear(in, out, bias=False) applied to the last dim).
    return {
        "Wq": jax.random.uniform(kq, (d_embed, d_model), jnp.float32, -b_in, b_in),
        "Wk": jax.random.uniform(kk, (d_embed, d_model), jnp.float32, -b_in, b_in),
        "Wv": jax.random.uniform(kv, (d_embed, d_model), jnp.float32, -b_in, b_in),
        "Wo": jax.random.uniform(ko, (d_model, d_embed), jnp.float32, -b_mid, b_mid),
    }


if __name__ == "__main__":
    key = jax.random.PRNGKey(0)

    # --- Config A: tiny shapes, f32 compute, distinct Q/K/V (general path) ---
    batch, seq, d_embed, d_model, n_heads = 2, 8, 32, 32, 4
    k0, k1, k2, k3, k4, key = jax.random.split(key, 6)
    Q = jax.random.normal(k0, (batch, seq, d_embed), jnp.float32)
    K = jax.random.normal(k1, (batch, seq, d_embed), jnp.float32)
    V = jax.random.normal(k2, (batch, seq, d_embed), jnp.float32)
    TUPE = jax.random.normal(k3, (batch, n_heads, seq, seq), jnp.float32)
    params = _make_params(k4, d_embed, d_model)

    out = multi_head_attention_forward(Q, K, V, TUPE, params, n_heads,
                                       compute_dtype=jnp.float32)
    out = jax.block_until_ready(out)
    ref = reference_forward(Q, K, V, TUPE, params, n_heads)
    assert out.shape == (batch, seq, d_embed)
    assert jnp.allclose(out, ref, atol=1e-2, rtol=1e-2), "f32 config mismatch"

    # --- Config B: still-small shapes, bf16 MXU operands, fused-QKV
    #     self-attention path, multi-step tiled grids (K-accumulation and
    #     multi-step online softmax both exercised). ---
    batch, seq, d_embed, d_model, n_heads = 2, 256, 256, 128, 8
    k0, k1, k2, key = jax.random.split(key, 4)
    X = jax.random.normal(k0, (batch, seq, d_embed), jnp.float32)
    TUPE = jax.random.normal(k1, (batch, n_heads, seq, seq), jnp.float32)
    params = _make_params(k2, d_embed, d_model)

    out = multi_head_attention_forward(X, X, X, TUPE, params, n_heads,
                                       compute_dtype=jnp.bfloat16,
                                       mm_tiles=(256, 128, 128),
                                       attn_tiles=(128, 128))
    out = jax.block_until_ready(out)
    ref = reference_forward(X, X, X, TUPE, params, n_heads)
    assert out.shape == (batch, seq, d_embed)
    max_err = float(jnp.max(jnp.abs(out - ref)))
    assert jnp.allclose(out, ref, atol=3e-2, rtol=3e-2), (
        f"bf16 config mismatch (max abs err {max_err})")

    print("KERNEL_OK")
</pallas_src>

<mosaic_0001>
module attributes {stable_mosaic.version = 11 : i64} {
  func.func @_matmul_kernel(%arg0: i32, %arg1: i32, %arg2: i32, %arg3: i32, %arg4: memref<1x16x32xf32, #tpu.memory_space<vmem>>, %arg5: memref<1x32x32xf32, #tpu.memory_space<vmem>>, %arg6: memref<1x16x32xf32, #tpu.memory_space<vmem>>, %arg7: memref<16x32xf32, #tpu.memory_space<vmem>>) attributes {dimension_semantics = [#tpu.dimension_semantics<parallel>, #tpu.dimension_semantics<parallel>, #tpu.dimension_semantics<parallel>, #tpu.dimension_semantics<arbitrary>], iteration_bounds = array<i64: 1, 1, 1, 1>, scalar_prefetch = 0 : i64, scratch_operands = 1 : i64, tpu.core_type = #tpu.core_type<tc>, window_params = [{transform_indices = @transform_0, window_bounds = array<i64: 1, 16, 32>}, {transform_indices = @transform_1, window_bounds = array<i64: 1, 32, 32>}, {transform_indices = @transform_2, window_bounds = array<i64: 1, 16, 32>}]} {
    %c0_i32 = arith.constant 0 : i32
    %0 = arith.cmpi eq, %arg3, %c0_i32 : i32
    %1 = arith.extui %0 : i1 to i32
    %c0_i32_0 = arith.constant 0 : i32
    %2 = arith.cmpi ne, %1, %c0_i32_0 : i32
    scf.if %2 {
      %cst_12 = arith.constant 0.000000e+00 : f32
      %14 = vector.broadcast %cst_12 : f32 to vector<16x32xf32>
      %c0_13 = arith.constant 0 : index
      %c0_14 = arith.constant 0 : index
      %15 = vector.load %arg7[%c0_13, %c0_14] : memref<16x32xf32, #tpu.memory_space<vmem>>, vector<16x32xf32>
      tpu.vector_store %arg7[%c0_13, %c0_14], %14 {strides = array<i32>} : memref<16x32xf32, #tpu.memory_space<vmem>>, vector<16x32xf32>,
    } else {
    }
    %c0 = arith.constant 0 : index
    %c0_1 = arith.constant 0 : index
    %3 = vector.load %arg7[%c0, %c0_1] : memref<16x32xf32, #tpu.memory_space<vmem>>, vector<16x32xf32>
    %c0_2 = arith.constant 0 : index
    %c0_3 = arith.constant 0 : index
    %c0_4 = arith.constant 0 : index
    %4 = vector.load %arg4[%c0_2, %c0_3, %c0_4] : memref<1x16x32xf32, #tpu.memory_space<vmem>>, vector<1x16x32xf32>
    %5 = vector.shape_cast %4 : vector<1x16x32xf32> to vector<16x32xf32>
    %c0_5 = arith.constant 0 : index
    %c0_6 = arith.constant 0 : index
    %c0_7 = arith.constant 0 : index
    %6 = vector.load %arg5[%c0_5, %c0_6, %c0_7] : memref<1x32x32xf32, #tpu.memory_space<vmem>>, vector<1x32x32xf32>
    %7 = vector.shape_cast %6 : vector<1x32x32xf32> to vector<32x32xf32>
    %cst = arith.constant dense<0.000000e+00> : vector<16x32xf32>
    %8 = tpu.matmul %5, %7, %cst {dimension_numbers = #tpu.dot_dimension_numbers<[1], [0], [0], [1], [0, 0, 1, 1], [], []>} : vector<16x32xf32>, vector<32x32xf32>, vector<16x32xf32> -> vector<16x32xf32>
    %9 = arith.addf %3, %8 : vector<16x32xf32>
    %c0_8 = arith.constant 0 : index
    %c0_9 = arith.constant 0 : index
    %10 = vector.load %arg7[%c0_8, %c0_9] : memref<16x32xf32, #tpu.memory_space<vmem>>, vector<16x32xf32>
    tpu.vector_store %arg7[%c0_8, %c0_9], %9 {strides = array<i32>} : memref<16x32xf32, #tpu.memory_space<vmem>>, vector<16x32xf32>,
    %c0_i32_10 = arith.constant 0 : i32
    %11 = arith.cmpi eq, %arg3, %c0_i32_10 : i32
    %12 = arith.extui %11 : i1 to i32
    %c0_i32_11 = arith.constant 0 : i32
    %13 = arith.cmpi ne, %12, %c0_i32_11 : i32
    scf.if %13 {
      %c0_12 = arith.constant 0 : index
      %c0_13 = arith.constant 0 : index
      %14 = vector.load %arg7[%c0_12, %c0_13] : memref<16x32xf32, #tpu.memory_space<vmem>>, vector<16x32xf32>
      %c0_14 = arith.constant 0 : index
      %c0_15 = arith.constant 0 : index
      %c0_16 = arith.constant 0 : index
      %15 = vector.load %arg6[%c0_14, %c0_15, %c0_16] : memref<1x16x32xf32, #tpu.memory_space<vmem>>, vector<1x16x32xf32>
      %16 = vector.shape_cast %15 : vector<1x16x32xf32> to vector<16x32xf32>
      %17 = vector.shape_cast %14 : vector<16x32xf32> to vector<1x16x32xf32>
      tpu.vector_store %arg6[%c0_14, %c0_15, %c0_16], %17 {strides = array<i32>} : memref<1x16x32xf32, #tpu.memory_space<vmem>>, vector<1x16x32xf32>,
    } else {
    }
    return
  }
  func.func @transform_0(%arg0: i32, %arg1: i32, %arg2: i32, %arg3: i32) -> (i32, i32, i32) {
    %c0_i32 = arith.constant 0 : i32
    return %arg0, %arg1, %arg3 : i32, i32, i32
  }
  func.func @transform_1(%arg0: i32, %arg1: i32, %arg2: i32, %arg3: i32) -> (i32, i32, i32) {
    %c0_i32 = arith.constant 0 : i32
    return %arg0, %arg3, %arg2 : i32, i32, i32
  }
  func.func @transform_2(%arg0: i32, %arg1: i32, %arg2: i32, %arg3: i32) -> (i32, i32, i32) {
    %c0_i32 = arith.constant 0 : i32
    return %arg0, %arg1, %arg2 : i32, i32, i32
  }
}

</mosaic_0001>

<bundles_post_ra>
// kernel: tpu_custom_call.1
= control target key start
LH: loop header
LB: loop body
LE: loop exit
PB: predicated region body
PF: predicated region fallthrough
CT: control target
= control target key end

     0   :  { %7 = vsyncpa [#allocation4], 0  ;;  %s345_s0 = inlined_call_operand.hbm [shape: f32[1,16,32], index: 0, kind: input, shape index: {}]   ;;  %s346_s1 = inlined_call_operand.hbm [shape: f32[1,32,32], index: 1, kind: input, shape index: {}]   ;;  %s347_s2 = inlined_call_operand.hbm [shape: f32[1,16,32], index: 2, kind: output, shape index: {}]  }
   0x1   :  { %8 = vsyncpa [#allocation7], 0 }
   0x2   :  { %9 = vsyncpa [#allocation5], 0  ;;  %s271_s9 = smov [#allocation3]   ;;  %s199_s13 = scalar_lea.hbm %s345_s0, 256 }
   0x3   :  { %s15_s10 = sshll.u32 %s271_s9, 4  ;;  %p200_p0 = scmp.ne.s32.totalorder %s345_s0, %s199_s13  ;;  %s16_s10 = int_to_ptr.vmem [resolvable:$true] %s15_s10 }
   0x4   :  { %p203_p1 = scmp.lt.u32.totalorder %s199_s13, %s345_s0 }
   0x6   :  { %p205_p2 = pnand %p203_p1, %p200_p0 }
   0x8   :  { %208 = shalt.err (!%p205_p2)
}
   0x9   :  { %s209_s18 = scalar_lea.vmem %s16_s10, 256  ;;  %p214_p4 = scmp.lt.s32.totalorder %s16_s10, %s16_s10 }
   0xa   :  { %p210_p3 = scmp.ne.s32.totalorder %s16_s10, %s209_s18  ;;  %p215_p5 = scmp.lt.s32.totalorder %s209_s18, %s209_s18 }
   0xc   :  { %p216_p6 = por %p215_p5, %p214_p4 }
   0xe   :  { %p217_p7 = pnand %p216_p6, %p210_p3 }
  0x10   :  { %220 = shalt.err (!%p217_p7)
}
  0x11   :  { %s272_s19 = smov 128   ;;  %s273_s20 = smov 8  }
  0x12   :  { %21 = dma.hbm_to_vmem [thread:$0]  %s345_s0, 256, %s16_s10, [#allocation4], %s272_s19, %s272_s19, %s273_s20  }
  0x13   :  { %s274_s23 = smov [#allocation6]   ;;  %s221_s27 = scalar_lea.hbm %s346_s1, 512 }
  0x14   :  { %s27_s24 = sshll.u32 %s274_s23, 4  ;;  %p222_p8 = scmp.ne.s32.totalorder %s346_s1, %s221_s27  ;;  %s28_s24 = int_to_ptr.vmem [resolvable:$true] %s27_s24 }
  0x15   :  { %p225_p9 = scmp.lt.u32.totalorder %s221_s27, %s346_s1 }
  0x17   :  { %p227_p10 = pnand %p225_p9, %p222_p8 }
  0x19   :  { %230 = shalt.err (!%p227_p10)
}
  0x1a   :  { %s231_s4 = scalar_lea.vmem %s28_s24, 512  ;;  %p236_p12 = scmp.lt.s32.totalorder %s28_s24, %s28_s24 }
  0x1b   :  { %p232_p11 = scmp.ne.s32.totalorder %s28_s24, %s231_s4  ;;  %p237_p13 = scmp.lt.s32.totalorder %s231_s4, %s231_s4 }
  0x1d   :  { %p238_p0 = por %p237_p13, %p236_p12 }
  0x1f   :  { %p239_p1 = pnand %p238_p0, %p232_p11 }
  0x21   :  { %242 = shalt.err (!%p239_p1)
}
  0x22   :  { %33 = dma.hbm_to_vmem [thread:$0]  %s346_s1, 512, %s28_s24, [#allocation7], %s272_s19, %s272_s19, %s273_s20  }
  0x23   :  { %265 = dma.done.wait [#allocation4], 256  }
  0x24   :  { %266 = vsyncadd [#allocation4], 4294967040 }
  0x25   :  { %267 = dma.done.wait [#allocation7], 512  }
  0x26   :  { %268 = vsyncadd [#allocation7], 4294966784  ;;  %vm44_vm0 = vcmask 261120   ;;  %v275_v0 = vmov 0.0   ;;  %v51_v1 = vld [vmem:[#allocation6] sm:$0xff]  ;;  %v52_v2 = vld [vmem:[#allocation6 + $0x8] sm:$0xff] }
  0x27   :  { %46 = vst.msk [vmem:[#allocation2 + $0x8] sm:$0xff] %vm44_vm0, %v275_v0  ;;  %45 = vst.msk [vmem:[#allocation2] sm:$0xff] %vm44_vm0, %v275_v0  ;;  %v53_v3 = vld [vmem:[#allocation6 + $0x10] sm:$0xff]  ;;  %v185_v4 = vpack.c.bf16 %v52_v2, %v51_v1  ;;  %v54_v5 = vld [vmem:[#allocation6 + $0x18] sm:$0xff]  ;;  %s276_s1 = smov [#allocation8]  }
  0x28   :  { %v49_v6 = vld [vmem:[#allocation3] sm:$0xff]  ;;  %v189_v7 = vpack.c.bf16 %v54_v5, %v53_v3  ;;  %v50_v8 = vld [vmem:[#allocation3 + $0x8] sm:$0xff]  ;;  %s153_s6 = sshll.u32 %s276_s1, 4  ;;  %s154_s6 = int_to_ptr.vmem [resolvable:$true] %s153_s6 }
  0x29   :  { %182 = vmatprep.mubr.msk.f32.mxu0 %vm44_vm0, %v49_v6  ;;  %186 = vmatprep.subr.bf16.mxu0 %v185_v4  ;;  %s243_s7 = scalar_lea.vmem %s154_s6, 256  ;;  %p248_p3 = scmp.lt.s32.totalorder %s154_s6, %s154_s6 }
  0x2a   :  { %188 = vmatpush3.bf16.msra.mxu0 %v185_v4  ;;  %p244_p2 = scmp.ne.s32.totalorder %s154_s6, %s243_s7  ;;  %p249_p4 = scmp.lt.s32.totalorder %s243_s7, %s243_s7 }
  0x2b   :  { %190 = vmatprep.subr.bf16.mxu0 %v189_v7 }
  0x2c   :  { %p250_p5 = por %p249_p4, %p248_p3 }
  0x2e   :  { %192 = vmatpush3.bf16.msra.mxu0 %v189_v7  ;;  %v48_v9 = vld [vmem:[#allocation2 + $0x8] sm:$0xff]  ;;  %v47_v10 = vld [vmem:[#allocation2] sm:$0xff]  ;;  %p251_p6 = pnand %p250_p5, %p244_p2 }
  0x31   :  { %183 = vmatmul.mubr.msk.f32.vlgmr.msra.gmra.mrb[0].mxu0 %vm44_vm0, %v50_v8 }
 0x104   :  { %v184_v11 = vpop.f32.mrb[0].mxu0 }
 0x105   :  { %v138_v12 = vadd.f32 %v184_v11, %v48_v9  ;;  %v128_v13 = vpop.f32.mrb[1].mxu0 }
 0x106   :  { %v137_v14 = vadd.f32 %v128_v13, %v47_v10 }
 0x107   :  { %140 = vst.msk [vmem:[#allocation2 + $0x8] sm:$0xff] %vm44_vm0, %v138_v12 }
 0x108   :  { %139 = vst.msk [vmem:[#allocation2] sm:$0xff] %vm44_vm0, %v137_v14 }
 0x10e   :  { %v145_v15 = vld [vmem:[#allocation2 + $0x8] sm:$0xff] }
 0x10f   :  { %v144_v16 = vld [vmem:[#allocation2] sm:$0xff]  ;;  %147 = vst.msk [vmem:[#allocation8 + $0x8] sm:$0xff] %vm44_vm0, %v145_v15 }
 0x110   :  { %146 = vst.msk [vmem:[#allocation8] sm:$0xff] %vm44_vm0, %v144_v16 }
 0x111   :  { %254 = shalt.err (!%p251_p6)
}
 0x112   :  { %s255_s10 = scalar_lea.hbm %s347_s2, 256 }
 0x113   :  { %p256_p7 = scmp.ne.s32.totalorder %s347_s2, %s255_s10  ;;  %p259_p8 = scmp.lt.u32.totalorder %s255_s10, %s347_s2 }
 0x115   :  { %p261_p9 = pnand %p259_p8, %p256_p7 }
 0x117   :  { %264 = shalt.err (!%p261_p9)
}
 0x118   :  { %159 = dma.vmem_to_hbm [thread:$0]  %s154_s6, 256, %s347_s2, [#allocation5], %s272_s19, %s272_s19, %s273_s20  }
 0x119   :  { %269 = dma.done.wait [#allocation5], 256  }
 0x11a   :  { %270 = vsyncadd [#allocation5], 4294967040 }
 0x11b   :  { %163 = vsyncpa [#allocation4], 1 }
 0x11c   :  { %164 = vsyncpa [#allocation7], 1 }
 0x11d   :  { %165 = vsyncpa [#allocation5], 1 }

</bundles_post_ra>
